<compile_context>
chip_gen: v7x
topology: tpu7x:2x2x1
jax: 0.10.0
libtpu: 0.0.40
codegen_flags: <defaults>
</compile_context>

<pallas_src>
import functools
import numpy as np

import jax
import jax.numpy as jnp
from jax.experimental import pallas as pl
from jax.experimental.pallas import tpu as pltpu


# ----------------------------------------------------------------------------
# Pallas kernel: fused 3-layer MLP (tanh, tanh, linear)
# ----------------------------------------------------------------------------

def _matrixnet_kernel(x_ref, w1_ref, w2_ref, w3_ref, b_ref, o_ref, *,
                      hidden_dim, output_dim):
    b = b_ref[...]                         # (3, max(hidden_dim, output_dim))
    b1 = b[0:1, :hidden_dim]               # keep 2-D for clean broadcasting
    b2 = b[1:2, :hidden_dim]
    b3 = b[2:3, :output_dim]

    h = jnp.tanh(jnp.dot(x_ref[...], w1_ref[...],
                         preferred_element_type=jnp.float32) + b1)
    h = jnp.tanh(jnp.dot(h, w2_ref[...],
                         preferred_element_type=jnp.float32) + b2)
    # TODO(synk): output_dim < 128 lowers to a masked (vst.msk) store; padding
    # the output to a lane-dense 128 would require a host-side slice that costs
    # more than the masked store at these shapes, so the narrow store is kept.
    o_ref[...] = jnp.dot(h, w3_ref[...],
                         preferred_element_type=jnp.float32) + b3


# ----------------------------------------------------------------------------
# Parameter init (deterministic; matches torch shapes; orthogonal weights)
# ----------------------------------------------------------------------------

def _orthogonal(key, out_dim, in_dim, gain=1.0):
    big, small = max(out_dim, in_dim), min(out_dim, in_dim)
    a = jax.random.normal(key, (big, small), dtype=jnp.float32)
    q, r = jnp.linalg.qr(a)
    sign = jnp.sign(jnp.diagonal(r))
    sign = jnp.where(sign == 0, jnp.float32(1.0), sign)  # avoid zeroed columns
    q = q * sign[None, :]
    w = q if out_dim >= in_dim else q.T
    return (gain * w).astype(jnp.float32)                 # (out, in) torch layout


class MatrixNetPallas:
    """JAX/Pallas re-implementation of MatrixNet.forward (MLP + reshape)."""

    def __init__(self, input_dim, hidden_dim, output_dim, nonlinearity='tanh',
                 bias_bool=True, shape=(2, 2), init_gain=1.0,
                 key=jax.random.PRNGKey(0)):
        assert nonlinearity == 'tanh'
        self.shape = tuple(shape)
        self.input_dim = input_dim
        self.hidden_dim = hidden_dim
        self.output_dim = output_dim

        k1, k2, k3, kb1, kb2, kb3 = jax.random.split(key, 6)
        # Store weights in kernel layout (in_features, out_features).
        self.w1 = _orthogonal(k1, hidden_dim, input_dim, init_gain).T
        self.w2 = _orthogonal(k2, hidden_dim, hidden_dim, init_gain).T
        self.w3 = _orthogonal(k3, output_dim, hidden_dim, init_gain).T

        # All biases packed into one array (perf feedback: fewer operands/DMAs).
        bw = max(hidden_dim, output_dim)
        bnd1 = 1.0 / np.sqrt(input_dim)
        bnd2 = 1.0 / np.sqrt(hidden_dim)
        b = jnp.zeros((3, bw), jnp.float32)
        b = b.at[0, :hidden_dim].set(
            jax.random.uniform(kb1, (hidden_dim,), jnp.float32, -bnd1, bnd1))
        b = b.at[1, :hidden_dim].set(
            jax.random.uniform(kb2, (hidden_dim,), jnp.float32, -bnd2, bnd2))
        if bias_bool:
            b = b.at[2, :output_dim].set(
                jax.random.uniform(kb3, (output_dim,), jnp.float32, -bnd2, bnd2))
        self.bias = b

    def __call__(self, x):
        x = x.astype(jnp.float32)
        bs = x.shape[0]

        # Batch tiling only when it pays off (large batch -> "parallel" grid
        # axis can be sharded across TensorCores on v7x). At small batch a
        # single grid=(1,) step keeps fixed launch/step overhead minimal.
        if bs > 512 and bs % 512 == 0:
            tile_bs = 512
        else:
            tile_bs = bs
        grid = (bs // tile_bs,)

        kernel = functools.partial(_matrixnet_kernel,
                                   hidden_dim=self.hidden_dim,
                                   output_dim=self.output_dim)
        flat = pl.pallas_call(
            kernel,
            out_shape=jax.ShapeDtypeStruct((bs, self.output_dim), jnp.float32),
            grid=grid,
            in_specs=[
                pl.BlockSpec((tile_bs, self.input_dim), lambda i: (i, 0)),
                pl.BlockSpec(self.w1.shape, lambda i: (0, 0)),
                pl.BlockSpec(self.w2.shape, lambda i: (0, 0)),
                pl.BlockSpec(self.w3.shape, lambda i: (0, 0)),
                pl.BlockSpec(self.bias.shape, lambda i: (0, 0)),
            ],
            out_specs=pl.BlockSpec((tile_bs, self.output_dim), lambda i: (i, 0)),
            compiler_params=pltpu.CompilerParams(
                dimension_semantics=("parallel",)),
        )(x, self.w1, self.w2, self.w3, self.bias)

        # torch: flatten.view(-1, *self.shape) -- free metadata reshape.
        return flat.reshape(-1, *self.shape)


# ----------------------------------------------------------------------------
# Pure-JAX reference (mirrors the torch forward) for validation
# ----------------------------------------------------------------------------

def _reference(model, x):
    x = x.astype(jnp.float32)
    h = jnp.tanh(x @ model.w1 + model.bias[0, :model.hidden_dim])
    h = jnp.tanh(h @ model.w2 + model.bias[1, :model.hidden_dim])
    y = h @ model.w3 + model.bias[2, :model.output_dim]
    return y.reshape(-1, *model.shape)


# ----------------------------------------------------------------------------
# Demo
# ----------------------------------------------------------------------------

if __name__ == "__main__":
    key = jax.random.PRNGKey(0)
    kx, kp = jax.random.split(key)

    bs, input_dim, hidden_dim, shape = 8, 6, 32, (2, 2)
    output_dim = shape[0] * shape[1]

    x = jax.random.normal(kx, (bs, input_dim), jnp.float32)
    model = MatrixNetPallas(input_dim, hidden_dim, output_dim,
                            bias_bool=True, shape=shape, init_gain=1.0, key=kp)

    y = jax.block_until_ready(model(x))
    y_ref = jax.block_until_ready(_reference(model, x))

    assert y.shape == (bs, *shape)
    np.testing.assert_allclose(np.asarray(y), np.asarray(y_ref),
                               rtol=1e-4, atol=1e-4)

    print("KERNEL_OK")
</pallas_src>

<mosaic_0001>
module attributes {stable_mosaic.version = 11 : i64} {
  func.func @_matrixnet_kernel(%arg0: i32, %arg1: memref<8x6xf32, #tpu.memory_space<vmem>>, %arg2: memref<6x32xf32, #tpu.memory_space<vmem>>, %arg3: memref<32x32xf32, #tpu.memory_space<vmem>>, %arg4: memref<32x4xf32, #tpu.memory_space<vmem>>, %arg5: memref<3x32xf32, #tpu.memory_space<vmem>>, %arg6: memref<8x4xf32, #tpu.memory_space<vmem>>) attributes {dimension_semantics = [#tpu.dimension_semantics<parallel>], iteration_bounds = array<i64: 1>, scalar_prefetch = 0 : i64, scratch_operands = 0 : i64, tpu.core_type = #tpu.core_type<tc>, window_params = [{transform_indices = @transform_0, window_bounds = array<i64: 8, 6>}, {pipeline_mode = #tpu.pipeline_mode<synchronous>, transform_indices = @transform_1, window_bounds = array<i64: 6, 32>}, {pipeline_mode = #tpu.pipeline_mode<synchronous>, transform_indices = @transform_2, window_bounds = array<i64: 32, 32>}, {pipeline_mode = #tpu.pipeline_mode<synchronous>, transform_indices = @transform_3, window_bounds = array<i64: 32, 4>}, {pipeline_mode = #tpu.pipeline_mode<synchronous>, transform_indices = @transform_4, window_bounds = array<i64: 3, 32>}, {transform_indices = @transform_5, window_bounds = array<i64: 8, 4>}]} {
    %c0 = arith.constant 0 : index
    %c0_0 = arith.constant 0 : index
    %0 = vector.load %arg5[%c0, %c0_0] : memref<3x32xf32, #tpu.memory_space<vmem>>, vector<3x32xf32>
    %1 = vector.extract_strided_slice %0 {offsets = [0, 0], sizes = [1, 32], strides = [1, 1]} : vector<3x32xf32> to vector<1x32xf32>
    %2 = vector.extract_strided_slice %0 {offsets = [1, 0], sizes = [1, 32], strides = [1, 1]} : vector<3x32xf32> to vector<1x32xf32>
    %3 = vector.extract_strided_slice %0 {offsets = [2, 0], sizes = [1, 4], strides = [1, 1]} : vector<3x32xf32> to vector<1x4xf32>
    %c0_1 = arith.constant 0 : index
    %c0_2 = arith.constant 0 : index
    %4 = vector.load %arg1[%c0_1, %c0_2] : memref<8x6xf32, #tpu.memory_space<vmem>>, vector<8x6xf32>
    %c0_3 = arith.constant 0 : index
    %c0_4 = arith.constant 0 : index
    %5 = vector.load %arg2[%c0_3, %c0_4] : memref<6x32xf32, #tpu.memory_space<vmem>>, vector<6x32xf32>
    %cst = arith.constant dense<0.000000e+00> : vector<8x32xf32>
    %6 = tpu.matmul %4, %5, %cst {dimension_numbers = #tpu.dot_dimension_numbers<[1], [0], [0], [1], [0, 0, 1, 1], [], []>} : vector<8x6xf32>, vector<6x32xf32>, vector<8x32xf32> -> vector<8x32xf32>
    %7 = vector.broadcast %1 : vector<1x32xf32> to vector<8x32xf32>
    %8 = arith.addf %6, %7 : vector<8x32xf32>
    %9 = math.tanh %8 : vector<8x32xf32>
    %c0_5 = arith.constant 0 : index
    %c0_6 = arith.constant 0 : index
    %10 = vector.load %arg3[%c0_5, %c0_6] : memref<32x32xf32, #tpu.memory_space<vmem>>, vector<32x32xf32>
    %cst_7 = arith.constant dense<0.000000e+00> : vector<8x32xf32>
    %11 = tpu.matmul %9, %10, %cst_7 {dimension_numbers = #tpu.dot_dimension_numbers<[1], [0], [0], [1], [0, 0, 1, 1], [], []>} : vector<8x32xf32>, vector<32x32xf32>, vector<8x32xf32> -> vector<8x32xf32>
    %12 = vector.broadcast %2 : vector<1x32xf32> to vector<8x32xf32>
    %13 = arith.addf %11, %12 : vector<8x32xf32>
    %14 = math.tanh %13 : vector<8x32xf32>
    %c0_8 = arith.constant 0 : index
    %c0_9 = arith.constant 0 : index
    %15 = vector.load %arg4[%c0_8, %c0_9] : memref<32x4xf32, #tpu.memory_space<vmem>>, vector<32x4xf32>
    %cst_10 = arith.constant dense<0.000000e+00> : vector<8x4xf32>
    %16 = tpu.matmul %14, %15, %cst_10 {dimension_numbers = #tpu.dot_dimension_numbers<[1], [0], [0], [1], [0, 0, 1, 1], [], []>} : vector<8x32xf32>, vector<32x4xf32>, vector<8x4xf32> -> vector<8x4xf32>
    %17 = vector.broadcast %3 : vector<1x4xf32> to vector<8x4xf32>
    %18 = arith.addf %16, %17 : vector<8x4xf32>
    %c0_11 = arith.constant 0 : index
    %c0_12 = arith.constant 0 : index
    %19 = vector.load %arg6[%c0_11, %c0_12] : memref<8x4xf32, #tpu.memory_space<vmem>>, vector<8x4xf32>
    tpu.vector_store %arg6[%c0_11, %c0_12], %18 {strides = array<i32>} : memref<8x4xf32, #tpu.memory_space<vmem>>, vector<8x4xf32>,
    return
  }
  func.func @transform_0(%arg0: i32) -> (i32, i32) {
    %c0_i32 = arith.constant 0 : i32
    %c0_i32_0 = arith.constant 0 : i32
    return %arg0, %c0_i32 : i32, i32
  }
  func.func @transform_1(%arg0: i32) -> (i32, i32) {
    %c0_i32 = arith.constant 0 : i32
    %c0_i32_0 = arith.constant 0 : i32
    %c0_i32_1 = arith.constant 0 : i32
    return %c0_i32, %c0_i32_0 : i32, i32
  }
  func.func @transform_2(%arg0: i32) -> (i32, i32) {
    %c0_i32 = arith.constant 0 : i32
    %c0_i32_0 = arith.constant 0 : i32
    %c0_i32_1 = arith.constant 0 : i32
    return %c0_i32, %c0_i32_0 : i32, i32
  }
  func.func @transform_3(%arg0: i32) -> (i32, i32) {
    %c0_i32 = arith.constant 0 : i32
    %c0_i32_0 = arith.constant 0 : i32
    %c0_i32_1 = arith.constant 0 : i32
    return %c0_i32, %c0_i32_0 : i32, i32
  }
  func.func @transform_4(%arg0: i32) -> (i32, i32) {
    %c0_i32 = arith.constant 0 : i32
    %c0_i32_0 = arith.constant 0 : i32
    %c0_i32_1 = arith.constant 0 : i32
    return %c0_i32, %c0_i32_0 : i32, i32
  }
  func.func @transform_5(%arg0: i32) -> (i32, i32) {
    %c0_i32 = arith.constant 0 : i32
    %c0_i32_0 = arith.constant 0 : i32
    return %arg0, %c0_i32 : i32, i32
  }
}

</mosaic_0001>

<bundles_post_ra>
// kernel: tpu_custom_call.1
= control target key start
LH: loop header
LB: loop body
LE: loop exit
PB: predicated region body
PF: predicated region fallthrough
CT: control target
= control target key end

     0   :  { %10 = vsyncpa [#allocation3], 0  ;;  %s376_s18 = smov [#allocation2]   ;;  %s457_s0 = inlined_call_operand.vmem [shape: f32[8,6], index: 0, kind: input, shape index: {}]   ;;  %s458_s1 = inlined_call_operand.hbm [shape: f32[6,32], index: 1, kind: input, shape index: {}]   ;;  %s459_s2 = inlined_call_operand.vmem [shape: f32[32,32], index: 2, kind: input, shape index: {}]   ;;  %s460_s3 = inlined_call_operand.vmem [shape: f32[32,4], index: 3, kind: input, shape index: {}]   ;;  %s461_s4 = inlined_call_operand.vmem [shape: f32[3,32], index: 4, kind: input, shape index: {}]   ;;  %s462_s5 = inlined_call_operand.vmem [shape: f32[8,4], index: 5, kind: output, shape index: {}]  }
   0x1   :  { %s19_s19 = sshll.u32 %s376_s18, 4  ;;  %s352_s22 = scalar_lea.hbm %s458_s1, 128  ;;  %s20_s19 = int_to_ptr.vmem [resolvable:$true] %s19_s19 }
   0x2   :  { %p353_p0 = scmp.ne.s32.totalorder %s458_s1, %s352_s22  ;;  %p356_p1 = scmp.lt.u32.totalorder %s352_s22, %s458_s1 }
   0x4   :  { %p358_p2 = pnand %p356_p1, %p353_p0 }
   0x6   :  { %361 = shalt.err (!%p358_p2)
}
   0x7   :  { %s362_s27 = scalar_lea.vmem %s20_s19, 128  ;;  %p367_p4 = scmp.lt.s32.totalorder %s20_s19, %s20_s19 }
   0x8   :  { %p363_p3 = scmp.ne.s32.totalorder %s20_s19, %s362_s27  ;;  %p368_p5 = scmp.lt.s32.totalorder %s362_s27, %s362_s27 }
   0xa   :  { %p369_p6 = por %p368_p5, %p367_p4 }
   0xc   :  { %p370_p7 = pnand %p369_p6, %p363_p3 }
   0xe   :  { %373 = shalt.err (!%p370_p7)
}
   0xf   :  { %22 = dma.hbm_to_vmem [thread:$0]  %s458_s1, 128, %s20_s19, [#allocation3]  }
  0x10   :  { %374 = dma.done.wait [#allocation3], 128  }
  0x11   :  { %375 = vsyncadd [#allocation3], 4294967168  ;;  %v377_v0 = vmov 0.0   ;;  %vm378_vm0 = vmmov 0   ;;  %vm43_vm1 = vcmask 1045504   ;;  %vm39_vm2 = vcmask 48128  }
  0x12   :  { %305 = vmatprep.subr.mxu0 %v377_v0  ;;  %307 = vmatprep.mubr.msk.f32.mxu0 %vm378_vm0, %v377_v0  ;;  %v34_v1 = vld [vmem:[#allocation2] sm:$0x3f]  ;;  %v119_v4 = vld [vmem:[%s459_s2 + $0x8] sm:$0xff]  ;;  %v120_v5 = vld [vmem:[%s459_s2 + $0x10] sm:$0xff]  ;;  %v379_v6 = vmov 0.0|0.0   ;;  %v35_v10 = vlaneseq  ;;  %vm126_vm3 = vcmask 261120  }
  0x13   :  { %318 = vmatprep.mubr.msk.f32.mxu1 %vm378_vm0, %v377_v0  ;;  %v33_v2 = vld [vmem:[%s457_s0] sm:$0xff]  ;;  %306 = vmatpush3.msk.msra.mxu0 %vm43_vm1, %v34_v1  ;;  %v121_v8 = vld [vmem:[%s459_s2 + $0x18] sm:$0xff]  ;;  %v202_v20 = vld [vmem:[%s460_s3 + $0x8] sm:$0xff]  ;;  %vm282_vm4 = vcmask 31744  }
  0x14   :  { %308 = vmatmul.mubr.msk.f32.vlgmr.msra.gmra.mrb[0].mxu0 %vm39_vm2, %v33_v2  ;;  %v118_v3 = vld [vmem:[%s459_s2] sm:$0xff]  ;;  %332 = vmatprep.subr.bf16.mxu1 %v379_v6  ;;  %v336_v9 = vpack.c.bf16 %v121_v8, %v120_v5  ;;  %v36_v11 = vshrl.u32 %v35_v10, 7  ;;  %v203_v21 = vld [vmem:[%s460_s3 + $0x10] sm:$0xff]  ;;  %v204_v23 = vld [vmem:[%s460_s3 + $0x18] sm:$0xff] }
  0x15   :  { %329 = vmatprep.mubr.msk.f32.mxu0 %vm378_vm0, %v377_v0  ;;  %v333_v7 = vpack.c.bf16 %v119_v4, %v118_v3  ;;  %338 = vmatprep.subr.bf16.mxu0 %v379_v6  ;;  %v32_v13 = vld [vmem:[%s461_s4] sm:$0x7]  ;;  %v342_v24 = vpack.c.bf16 %v204_v23, %v203_v21 }
  0x16   :  { %v37_v12 = vsub.s32 0, %v36_v11  ;;  %v201_v19 = vld [vmem:[%s460_s3] sm:$0xff]  ;;  %v124_v25 = vsub.s32 1, %v36_v11  ;;  %v207_v31 = vsub.s32 2, %v36_v11 }
  0x17   :  { %334 = vmatpush3.bf16.msra.mxu1 %v333_v7  ;;  %v339_v22 = vpack.c.bf16 %v202_v20, %v201_v19 }
  0x18   :  { %335 = vmatprep.subr.bf16.mxu1 %v379_v6  ;;  %v38_v14 = vrot.slane %v32_v13, %v37_v12  ;;  %v125_v26 = vrot.slane %v32_v13, %v124_v25  ;;  %v208_v32 = vrot.slane %v32_v13, %v207_v31 }
  0x19   :  { %340 = vmatpush3.bf16.msra.mxu0 %v339_v22 }
  0x1a   :  { %341 = vmatprep.subr.bf16.mxu0 %v379_v6 }
  0x1b   :  { %337 = vmatpush3.bf16.msra.mxu1 %v336_v9 }
  0x1d   :  { %343 = vmatpush3.bf16.msra.mxu0 %v342_v24 }
  0xe7   :  { %v113_v15 = vpop.f32.mrb[0].mxu0 }
  0xe8   :  { %v114_v16 = vadd.f32 %v113_v15, %v38_v14  ;;  %v309_v17 = vpop.f32.mrb[1].mxu0 }
  0xea   :  { %348 = vtanh.f32 %v114_v16 }
  0xf4   :  { %v349_v18 = vpop.eup %348 }
  0xf5   :  { %319 = vmatmul.mubr.msk.f32.vlgmr.msra.gmra.mrb[0].mxu1 %vm126_vm3, %v349_v18 }
 0x1c8   :  { %v196_v27 = vpop.f32.mrb[0].mxu1 }
 0x1c9   :  { %v197_v28 = vadd.f32 %v196_v27, %v125_v26  ;;  %v320_v29 = vpop.f32.mrb[1].mxu1 }
 0x1cb   :  { %350 = vtanh.f32 %v197_v28 }
 0x1d5   :  { %v351_v30 = vpop.eup %350 }
 0x1d6   :  { %330 = vmatmul.mubr.msk.f32.vlgmr.msra.gmra.mrb[2].mxu0 %vm126_vm3, %v351_v30 }
 0x2a9   :  { %v278_v33 = vpop.f32.mrb[2].mxu0 }
 0x2aa   :  { %v279_v34 = vadd.f32 %v278_v33, %v208_v32  ;;  %v331_v35 = vpop.f32.mrb[3].mxu0 }
 0x2ac   :  { %283 = vst.msk [vmem:[%s462_s5] sm:$0xff] %vm282_vm4, %v279_v34 }
 0x2ad   :  { %288 = vsyncpa [#allocation3], 1 }

</bundles_post_ra>
